<compile_context>
chip_gen: v7x
topology: tpu7x:2x2x1
jax: 0.10.0
libtpu: 0.0.40
codegen_flags: <defaults>
</compile_context>

<pallas_src>
import functools

import jax
import jax.numpy as jnp
from jax import lax
from jax.experimental import pallas as pl
from jax.experimental.pallas import tpu as pltpu


def _round_up(x, m):
    return ((x + m - 1) // m) * m


# Budget (bytes) for the double-buffered Ct tile stream. ~16 MiB keeps the
# per-step overhead small while fitting comfortably on v5e/v6e/v7x.
_C_STREAM_BYTES = 16 * 1024 * 1024


def _auto_num_splits():
    """2 on v7x (2 TensorCores per chip), 1 on v5e / v6e (single TC)."""
    try:
        kind = jax.devices()[0].device_kind.lower()
    except Exception:
        return 1
    return 2 if "v7" in kind else 1


def _inverse_hack_kernel(ct_ref, b_ref, o_ref, *, n_rows, tile_n, num_splits,
                         mask_needed):
    """One (split, n_tile) grid step: o += Ct_tile @ (Ct_tile.T @ b)."""
    n = pl.program_id(1)

    @pl.when(n == 0)
    def _init():
        o_ref[...] = jnp.zeros_like(o_ref)

    ct = ct_ref[...]                                     # (r, TILE_N)
    if mask_needed:
        # Zero the columns that fall past the real N: the ragged tail of the
        # last tile and/or fully phantom tiles of an uneven split. `mask_needed`
        # is a trace-time flag, so evenly tiled shapes pay nothing.
        gi = n * num_splits + pl.program_id(0)           # un-clamped tile index
        col = gi * tile_n + lax.broadcasted_iota(jnp.int32, ct.shape, 1)
        ct = jnp.where(col < n_rows, ct, jnp.zeros_like(ct))

    b = b_ref[...]                                       # (r, Kp)
    # t = Ct_tile.T @ b  -> (TILE_N, Kp); contraction over the (small) r axis.
    t = lax.dot_general(ct, b, dimension_numbers=(((0,), (0,)), ((), ())),
                        preferred_element_type=jnp.float32)
    # o += Ct_tile @ t   -> (r, Kp); the large N-contraction is a natural,
    # untransposed MXU op. Accumulate directly into the VMEM-resident output.
    o_ref[0, :, :] += jnp.dot(ct, t.astype(ct.dtype),
                              preferred_element_type=jnp.float32)


@functools.partial(jax.jit, static_argnames=("tile_n", "num_splits"))
def _inverse_hack_impl(Ct, b, *, tile_n, num_splits):
    r, N = Ct.shape
    rb, K = b.shape
    assert r == rb, "inner dims must match"
    assert tile_n == N or tile_n % 128 == 0, "tile_n must be 128-aligned or == N"

    # Lane-dense output: pad K up to a multiple of 128 (pad columns are zero).
    Kp = max(128, _round_up(K, 128))
    b_p = b if Kp == K else jnp.pad(b, ((0, 0), (0, Kp - K)))
    if b_p.dtype != Ct.dtype:
        # Keep the kernel dtype-uniform; b is tiny so this cast is negligible.
        b_p = b_p.astype(Ct.dtype)

    n_tiles = -(-N // tile_n)
    num_splits = max(1, min(num_splits, n_tiles))
    tiles_per_split = -(-n_tiles // num_splits)
    ragged_n = (N % tile_n) != 0
    phantom_tiles = (n_tiles % num_splits) != 0
    mask_needed = ragged_n or phantom_tiles

    # Tiles are assigned round-robin: split c owns global tiles
    # {c, c + num_splits, ...}. Phantom indices (>= n_tiles) are clamped for
    # the DMA and fully masked in-kernel -> no host-side padded copy of Ct.
    if phantom_tiles:
        def ct_index(c, n):
            return (0, jnp.minimum(n * num_splits + c, n_tiles - 1))
    else:
        def ct_index(c, n):
            return (0, n * num_splits + c)

    kernel = functools.partial(
        _inverse_hack_kernel, n_rows=N, tile_n=tile_n,
        num_splits=num_splits, mask_needed=mask_needed)

    # VMEM footprint: double-buffered Ct tile + resident b + resident output.
    c_item = Ct.dtype.itemsize
    b_item = b_p.dtype.itemsize
    r_sub_c = _round_up(r, 16 if c_item == 2 else 8)
    r_sub_b = _round_up(r, 16 if b_item == 2 else 8)
    r_sub_o = _round_up(r, 8)
    vmem_est = (2 * r_sub_c * tile_n * c_item
                + 2 * r_sub_b * Kp * b_item
                + 2 * r_sub_o * Kp * 4)
    vmem_limit = max(32 << 20, min(int(1.25 * vmem_est) + (4 << 20), 56 << 20))

    cost = pl.CostEstimate(
        flops=4 * num_splits * tiles_per_split * tile_n * r * Kp,
        transcendentals=0,
        bytes_accessed=(Ct.size * c_item + b_p.size * b_item
                        + num_splits * r * Kp * 4),
    )

    partials = pl.pallas_call(
        kernel,
        out_shape=jax.ShapeDtypeStruct((num_splits, r, Kp), jnp.float32),
        grid_spec=pltpu.PrefetchScalarGridSpec(
            num_scalar_prefetch=0,
            grid=(num_splits, tiles_per_split),
            in_specs=[
                pl.BlockSpec((r, tile_n), ct_index),          # streamed Ct tile
                pl.BlockSpec((r, Kp), lambda c, n: (0, 0)),   # resident b
            ],
            # One (r, Kp) f32 partial per split; constant block index across
            # the n axis -> VMEM-resident, accumulated in place.
            out_specs=pl.BlockSpec((1, r, Kp), lambda c, n: (c, 0, 0)),
        ),
        compiler_params=pltpu.CompilerParams(
            dimension_semantics=("parallel", "arbitrary"),
            vmem_limit_bytes=vmem_limit,
        ),
        cost_estimate=cost,
    )(Ct, b_p)

    out = partials[0] if num_splits == 1 else jnp.sum(partials, axis=0)
    return out[:, :K]


def inverse_hack_forward(Ct, b, *, tile_n=None, num_splits=None):
    """Compute C.T @ (C @ b) given the parameter in transposed layout Ct = C.T.

    Ct : (r, N)  -- store the parameter in this layout once, at init.
    b  : (r, K)
    returns (r, K) float32.
    """
    r, N = Ct.shape
    if num_splits is None:
        num_splits = _auto_num_splits()
    if tile_n is None:
        c_item = Ct.dtype.itemsize
        r_sub = _round_up(r, 16 if c_item == 2 else 8)
        budget_cols = _C_STREAM_BYTES // (2 * r_sub * c_item)
        tile_n = N if budget_cols >= N else max(128, (budget_cols // 128) * 128)
    tile_n = min(int(tile_n), N)
    return _inverse_hack_impl(Ct, b, tile_n=tile_n, num_splits=int(num_splits))


class InverseHack:
    """JAX/Pallas analogue of the PyTorch `inverse_hack` module.

    The (N, r) parameter C is generated like `torch.randn(N, r) * 1e-4` and
    stored once in transposed (r, N) layout so forward streams lane-dense
    tiles and never copies/transposes/casts C per call.  Pass
    param_dtype=jnp.bfloat16 to halve HBM traffic on the dominant stream
    (f32 accumulation is kept; ~bf16-level relative error).
    """

    def __init__(self, N, r, key, param_dtype=jnp.float32):
        C = jax.random.normal(key, (N, r), dtype=jnp.float32) * 1e-4
        self.Ct = jnp.asarray(C.T, dtype=param_dtype)   # one-time transpose

    def __call__(self, b):
        return inverse_hack_forward(self.Ct, b)

    # TODO(synk): full_forward (C @ (C.T @ b)) is not part of forward(); not
    # implemented as a kernel here.


if __name__ == "__main__":
    key = jax.random.PRNGKey(0)
    k_c, k_b, k_c2, k_b2 = jax.random.split(key, 4)

    # Case 1: small shapes consistent with the module (N=128, r=32, K=8).
    N, r, K = 128, 32, 8
    C = jax.random.normal(k_c, (N, r), dtype=jnp.float32) * 1e-4
    Ct = jnp.asarray(C.T)                       # one-time transpose "at init"
    b = jax.random.normal(k_b, (r, K), dtype=jnp.float32)

    out = jax.block_until_ready(inverse_hack_forward(Ct, b))
    ref = C.T @ (C @ b)
    assert out.shape == (r, K)
    assert jnp.allclose(out, ref, rtol=1e-5, atol=1e-8), "case 1 mismatch"

    # Case 2: exercises multi-tile streaming, the in-kernel ragged-N mask and
    # the phantom-tile clamp on the split axis (no host-side padding of Ct).
    N2 = 300
    C2 = jax.random.normal(k_c2, (N2, r), dtype=jnp.float32) * 1e-4
    Ct2 = jnp.asarray(C2.T)
    b2 = jax.random.normal(k_b2, (r, K), dtype=jnp.float32)

    out2 = jax.block_until_ready(
        inverse_hack_forward(Ct2, b2, tile_n=128, num_splits=2))
    ref2 = C2.T @ (C2 @ b2)
    assert out2.shape == (r, K)
    assert jnp.allclose(out2, ref2, rtol=1e-5, atol=1e-8), "case 2 mismatch"

    print("KERNEL_OK")
</pallas_src>

<mosaic_0001>
module attributes {stable_mosaic.version = 11 : i64} {
  func.func @_inverse_hack_kernel(%arg0: i32, %arg1: i32, %arg2: memref<32x128xf32, #tpu.memory_space<vmem>>, %arg3: memref<32x128xf32, #tpu.memory_space<vmem>>, %arg4: memref<1x32x128xf32, #tpu.memory_space<vmem>>) attributes {dimension_semantics = [#tpu.dimension_semantics<parallel>, #tpu.dimension_semantics<arbitrary>], iteration_bounds = array<i64: 1, 1>, scalar_prefetch = 0 : i64, scratch_operands = 0 : i64, tpu.core_type = #tpu.core_type<tc>, window_params = [{transform_indices = @transform_0, window_bounds = array<i64: 32, 128>}, {pipeline_mode = #tpu.pipeline_mode<synchronous>, transform_indices = @transform_1, window_bounds = array<i64: 32, 128>}, {transform_indices = @transform_2, window_bounds = array<i64: 1, 32, 128>}]} {
    %c0_i32 = arith.constant 0 : i32
    %0 = arith.cmpi eq, %arg1, %c0_i32 : i32
    %1 = arith.extui %0 : i1 to i32
    %c0_i32_0 = arith.constant 0 : i32
    %2 = arith.cmpi ne, %1, %c0_i32_0 : i32
    scf.if %2 {
      %cst_11 = arith.constant 0.000000e+00 : f32
      %13 = vector.broadcast %cst_11 : f32 to vector<1x32x128xf32>
      %c0_12 = arith.constant 0 : index
      %c0_13 = arith.constant 0 : index
      %c0_14 = arith.constant 0 : index
      %14 = vector.load %arg4[%c0_12, %c0_13, %c0_14] : memref<1x32x128xf32, #tpu.memory_space<vmem>>, vector<1x32x128xf32>
      tpu.vector_store %arg4[%c0_12, %c0_13, %c0_14], %13 {strides = array<i32>} : memref<1x32x128xf32, #tpu.memory_space<vmem>>, vector<1x32x128xf32>,
    } else {
    }
    %c0 = arith.constant 0 : index
    %c0_1 = arith.constant 0 : index
    %3 = vector.load %arg2[%c0, %c0_1] : memref<32x128xf32, #tpu.memory_space<vmem>>, vector<32x128xf32>
    %c0_2 = arith.constant 0 : index
    %c0_3 = arith.constant 0 : index
    %4 = vector.load %arg3[%c0_2, %c0_3] : memref<32x128xf32, #tpu.memory_space<vmem>>, vector<32x128xf32>
    %cst = arith.constant dense<0.000000e+00> : vector<128x128xf32>
    %5 = tpu.matmul %3, %4, %cst {dimension_numbers = #tpu.dot_dimension_numbers<[0], [0], [1], [1], [0, 1, 1, 1], [], []>} : vector<32x128xf32>, vector<32x128xf32>, vector<128x128xf32> -> vector<128x128xf32>
    %c0_4 = arith.constant 0 : index
    %c0_5 = arith.constant 0 : index
    %c0_6 = arith.constant 0 : index
    %6 = vector.load %arg4[%c0_4, %c0_5, %c0_6] : memref<1x32x128xf32, #tpu.memory_space<vmem>>, vector<1x32x128xf32>
    %7 = vector.shape_cast %6 : vector<1x32x128xf32> to vector<32x128xf32>
    %cst_7 = arith.constant dense<0.000000e+00> : vector<32x128xf32>
    %8 = tpu.matmul %3, %5, %cst_7 {dimension_numbers = #tpu.dot_dimension_numbers<[1], [0], [0], [1], [0, 0, 1, 1], [], []>} : vector<32x128xf32>, vector<128x128xf32>, vector<32x128xf32> -> vector<32x128xf32>
    %9 = arith.addf %7, %8 : vector<32x128xf32>
    %c0_8 = arith.constant 0 : index
    %c0_9 = arith.constant 0 : index
    %c0_10 = arith.constant 0 : index
    %10 = vector.load %arg4[%c0_8, %c0_9, %c0_10] : memref<1x32x128xf32, #tpu.memory_space<vmem>>, vector<1x32x128xf32>
    %11 = vector.shape_cast %10 : vector<1x32x128xf32> to vector<32x128xf32>
    %12 = vector.shape_cast %9 : vector<32x128xf32> to vector<1x32x128xf32>
    tpu.vector_store %arg4[%c0_8, %c0_9, %c0_10], %12 {strides = array<i32>} : memref<1x32x128xf32, #tpu.memory_space<vmem>>, vector<1x32x128xf32>,
    return
  }
  func.func @transform_0(%arg0: i32, %arg1: i32) -> (i32, i32) {
    %c1_i32 = arith.constant 1 : i32
    %0 = arith.muli %arg1, %c1_i32 : i32
    %1 = arith.addi %0, %arg0 : i32
    %c0_i32 = arith.constant 0 : i32
    %c0_i32_0 = arith.constant 0 : i32
    return %c0_i32, %1 : i32, i32
  }
  func.func @transform_1(%arg0: i32, %arg1: i32) -> (i32, i32) {
    %c0_i32 = arith.constant 0 : i32
    %c0_i32_0 = arith.constant 0 : i32
    %c0_i32_1 = arith.constant 0 : i32
    return %c0_i32, %c0_i32_0 : i32, i32
  }
  func.func @transform_2(%arg0: i32, %arg1: i32) -> (i32, i32, i32) {
    %c0_i32 = arith.constant 0 : i32
    %c0_i32_0 = arith.constant 0 : i32
    %c0_i32_1 = arith.constant 0 : i32
    return %arg0, %c0_i32, %c0_i32_0 : i32, i32, i32
  }
}

</mosaic_0001>

<bundles_post_ra>
// kernel: _inverse_hack_impl.1
= control target key start
LH: loop header
LB: loop body
LE: loop exit
PB: predicated region body
PF: predicated region fallthrough
CT: control target
= control target key end

     0   :  { %vm76_vm0 = vcmask 261120   ;;  %s623_s0 = inlined_call_operand.vmem [shape: f32[32,128], index: 0, kind: input, shape index: {}]   ;;  %s624_s1 = inlined_call_operand.vmem [shape: f32[32,128], index: 1, kind: input, shape index: {}]   ;;  %s625_s2 = inlined_call_operand.vmem [shape: f32[1,32,128], index: 2, kind: output, shape index: {}]  }
   0x1   :  { %v36_v0 = vld [vmem:[%s623_s0] sm:$0xff]  ;;  %v41_v2 = vld [vmem:[%s624_s1 + $0x8] sm:$0xff]  ;;  %v42_v5 = vld [vmem:[%s624_s1 + $0x10] sm:$0xff] }
   0x2   :  { %44 = vxpose.xlu0.b32.start [1/4] (short) %v36_v0, 128  ;;  %v40_v1 = vld [vmem:[%s624_s1] sm:$0xff]  ;;  %497 = vmatprep.mubr.f32.mxu1 %v36_v0  ;;  %v571_v3 = vld [vmem:[%s623_s0 + $0x8] sm:$0xff]  ;;  %v43_v6 = vld [vmem:[%s624_s1 + $0x18] sm:$0xff] }
   0x3   :  { %v503_v4 = vpack.c.bf16 %v41_v2, %v40_v1  ;;  %v507_v7 = vpack.c.bf16 %v43_v6, %v42_v5  ;;  %v583_v8 = vld [vmem:[%s623_s0 + $0x10] sm:$0xff]  ;;  %v589_v9 = vld [vmem:[%s623_s0 + $0x18] sm:$0xff] }
   0x5   :  { %504 = vmatprep.subr.bf16.mxu0 %v503_v4 }
   0x6   :  { %45 = vxpose.xlu0.b32.cont [2/4] (short) %v571_v3, 128  ;;  %506 = vmatpush3.bf16.msra.mxu0 %v503_v4 }
   0x7   :  { %508 = vmatprep.subr.bf16.mxu0 %v507_v7 }
   0xa   :  { %46 = vxpose.xlu0.b32.cont [3/4] (short) %v583_v8, 128  ;;  %510 = vmatpush3.bf16.msra.mxu0 %v507_v7 }
   0xe   :  { %47 = vxpose.xlu0.b32.end [4/4] (short) %v589_v9, 128 }
  0x82   :  { %v60_v10 = vpop.trf.xlu0 }
  0x83   :  { %441 = vmatprep.mubr.msk.f32.mxu0 %vm76_vm0, %v60_v10 }
  0x86   :  { %v61_v11 = vpop.trf.xlu0 }
  0x87   :  { %442 = vmatmul.mubr.msk.f32.vlgmr.msra.gmra.mrb[0].mxu0 %vm76_vm0, %v61_v11 }
  0x8a   :  { %v62_v12 = vpop.trf.xlu0 }
  0x8b   :  { %444 = vmatprep.mubr.msk.f32.mxu0 %vm76_vm0, %v62_v12 }
  0x8e   :  { %v63_v13 = vpop.trf.xlu0 }
  0x8f   :  { %445 = vmatmul.mubr.msk.f32.gmra.mrb[2].mxu0 %vm76_vm0, %v63_v13 }
  0x92   :  { %v64_v14 = vpop.trf.xlu0 }
  0x93   :  { %447 = vmatprep.mubr.msk.f32.mxu0 %vm76_vm0, %v64_v14 }
  0x96   :  { %v65_v15 = vpop.trf.xlu0 }
  0x97   :  { %448 = vmatmul.mubr.msk.f32.gmra.mrb[4].mxu0 %vm76_vm0, %v65_v15 }
  0x9a   :  { %v66_v16 = vpop.trf.xlu0 }
  0x9b   :  { %450 = vmatprep.mubr.msk.f32.mxu0 %vm76_vm0, %v66_v16 }
  0x9e   :  { %v67_v17 = vpop.trf.xlu0 }
  0x9f   :  { %451 = vmatmul.mubr.msk.f32.gmra.mrb[6].mxu0 %vm76_vm0, %v67_v17 }
  0xa2   :  { %v68_v18 = vpop.trf.xlu0 }
  0xa3   :  { %453 = vmatprep.mubr.msk.f32.mxu0 %vm76_vm0, %v68_v18 }
  0xa6   :  { %v69_v19 = vpop.trf.xlu0 }
  0xa7   :  { %454 = vmatmul.mubr.msk.f32.gmra.mrb[8].mxu0 %vm76_vm0, %v69_v19 }
  0xaa   :  { %v70_v20 = vpop.trf.xlu0 }
  0xab   :  { %456 = vmatprep.mubr.msk.f32.mxu0 %vm76_vm0, %v70_v20 }
  0xae   :  { %v71_v21 = vpop.trf.xlu0 }
  0xaf   :  { %457 = vmatmul.mubr.msk.f32.gmra.mrb[10].mxu0 %vm76_vm0, %v71_v21 }
  0xb2   :  { %v72_v22 = vpop.trf.xlu0 }
  0xb3   :  { %459 = vmatprep.mubr.msk.f32.mxu0 %vm76_vm0, %v72_v22 }
  0xb6   :  { %v73_v23 = vpop.trf.xlu0 }
  0xb7   :  { %460 = vmatmul.mubr.msk.f32.gmra.mrb[12].mxu0 %vm76_vm0, %v73_v23 }
  0xba   :  { %v74_v24 = vpop.trf.xlu0 }
  0xbb   :  { %462 = vmatprep.mubr.msk.f32.mxu0 %vm76_vm0, %v74_v24 }
  0xbe   :  { %v75_v25 = vpop.trf.xlu0 }
  0xbf   :  { %463 = vmatmul.mubr.msk.f32.gmra.mrb[14].mxu0 %vm76_vm0, %v75_v25 }
 0x15a   :  { %v443_v26 = vpop.f32.mrb[0].mxu0 }
 0x15b   :  { %v191_v27 = vpop.f32.mrb[1].mxu0 }
 0x15c   :  { %v511_v28 = vpack.c.bf16 %v443_v26, %v191_v27 }
 0x15e   :  { %512 = vmatprep.subr.bf16.mxu1 %v511_v28 }
 0x15f   :  { %514 = vmatpush3.bf16.msra.mxu1 %v511_v28 }
 0x162   :  { %v446_v29 = vpop.f32.mrb[2].mxu0 }
 0x163   :  { %v201_v30 = vpop.f32.mrb[3].mxu0 }
 0x164   :  { %v515_v31 = vpack.c.bf16 %v446_v29, %v201_v30 }
 0x166   :  { %516 = vmatprep.subr.bf16.mxu1 %v515_v31 }
 0x167   :  { %518 = vmatpush3.bf16.msra.mxu1 %v515_v31 }
 0x16a   :  { %v449_v32 = vpop.f32.mrb[4].mxu0 }
 0x16b   :  { %v211_v33 = vpop.f32.mrb[5].mxu0 }
 0x16c   :  { %v519_v34 = vpack.c.bf16 %v449_v32, %v211_v33 }
 0x16e   :  { %520 = vmatprep.subr.bf16.mxu1 %v519_v34 }
 0x16f   :  { %522 = vmatpush3.bf16.msra.mxu1 %v519_v34 }
 0x172   :  { %v452_v35 = vpop.f32.mrb[6].mxu0 }
 0x173   :  { %v221_v36 = vpop.f32.mrb[7].mxu0 }
 0x174   :  { %v523_v37 = vpack.c.bf16 %v452_v35, %v221_v36 }
 0x176   :  { %524 = vmatprep.subr.bf16.mxu1 %v523_v37 }
 0x177   :  { %526 = vmatpush3.bf16.msra.mxu1 %v523_v37 }
 0x17a   :  { %v455_v38 = vpop.f32.mrb[8].mxu0 }
 0x17b   :  { %v231_v39 = vpop.f32.mrb[9].mxu0 }
 0x17c   :  { %v527_v40 = vpack.c.bf16 %v455_v38, %v231_v39 }
 0x17e   :  { %528 = vmatprep.subr.bf16.mxu1 %v527_v40 }
 0x17f   :  { %530 = vmatpush3.bf16.msra.mxu1 %v527_v40 }
 0x182   :  { %v458_v41 = vpop.f32.mrb[10].mxu0 }
 0x183   :  { %v241_v42 = vpop.f32.mrb[11].mxu0 }
 0x184   :  { %v531_v43 = vpack.c.bf16 %v458_v41, %v241_v42 }
 0x186   :  { %532 = vmatprep.subr.bf16.mxu1 %v531_v43 }
 0x187   :  { %534 = vmatpush3.bf16.msra.mxu1 %v531_v43 }
 0x18a   :  { %v461_v44 = vpop.f32.mrb[12].mxu0 }
 0x18b   :  { %v251_v45 = vpop.f32.mrb[13].mxu0 }
 0x18c   :  { %v535_v46 = vpack.c.bf16 %v461_v44, %v251_v45 }
 0x18e   :  { %536 = vmatprep.subr.bf16.mxu1 %v535_v46 }
 0x18f   :  { %538 = vmatpush3.bf16.msra.mxu1 %v535_v46 }
 0x192   :  { %v464_v47 = vpop.f32.mrb[14].mxu0 }
 0x193   :  { %v261_v48 = vpop.f32.mrb[15].mxu0 }
 0x194   :  { %v539_v49 = vpack.c.bf16 %v464_v47, %v261_v48 }
 0x196   :  { %540 = vmatprep.subr.bf16.mxu1 %v539_v49 }
 0x197   :  { %542 = vmatpush3.bf16.msra.mxu1 %v539_v49 }
 0x19a   :  { %498 = vmatmul.mubr.f32.vlgmr.msra.gmra.mrb[0].mxu1 %v571_v3 }
 0x19b   :  { %500 = vmatprep.mubr.f32.mxu1 %v583_v8 }
 0x19e   :  { %501 = vmatmul.mubr.f32.gmra.mrb[2].mxu1 %v589_v9 }
 0x26d   :  { %v499_v50 = vpop.f32.mrb[0].mxu1 }
 0x26e   :  { %v340_v51 = vpop.f32.mrb[1].mxu1  ;;  %364 = vst [vmem:[%s625_s2 + $0x8] sm:$0xff] %v499_v50 }
 0x26f   :  { %363 = vst [vmem:[%s625_s2] sm:$0xff] %v340_v51 }
 0x271   :  { %v502_v52 = vpop.f32.mrb[2].mxu1 }
 0x272   :  { %v350_v53 = vpop.f32.mrb[3].mxu1  ;;  %366 = vst [vmem:[%s625_s2 + $0x18] sm:$0xff] %v502_v52 }
 0x273   :  { %365 = vst [vmem:[%s625_s2 + $0x10] sm:$0xff] %v350_v53 }

</bundles_post_ra>
